<compile_context>
chip_gen: v5e
topology: v5e:2x2
jax: 0.10.0
libtpu: 0.0.40
codegen_flags: <defaults>
</compile_context>

<pallas_src>
import jax
import jax.numpy as jnp
from jax.experimental import pallas as pl
from jax.experimental.pallas import tpu as pltpu

BASE_SCORE = 0.0  # XGBModule.__init__ forces params['base_score'] = 0
LANE = 128
SUBLANE = 8


def _round_up(n, m):
    return ((n + m - 1) // m) * m


def xgb_forward_kernel(xt_ref, featsel_t_ref, thr_t_ref, leaf_diff_t_ref,
                       bias_t_ref, fxt_ref):
    """Vectorized stump-ensemble prediction (== bst.predict + FX copy), transposed.

    xt_ref:          [F, tile_b]      f32  batch tile of features, batch on lanes
    featsel_t_ref:   [T_pad, F]       f32  one-hot feature selection (resident)
    thr_t_ref:       [T_pad, 1]       f32  split thresholds (resident)
    leaf_diff_t_ref: [O_pad, T_pad]   f32  (leaf_left - leaf_right)^T (resident)
    bias_t_ref:      [O_pad, 1]       f32  colsum(leaf_right) + base_score (resident)
    fxt_ref:         [O_pad, tile_b]  f32  FX^T output tile (lane-dense store)
    """
    xsel_t = jnp.dot(featsel_t_ref[...], xt_ref[...],
                     preferred_element_type=jnp.float32)        # [T_pad, tile_b] (MXU)
    go_left_t = (xsel_t < thr_t_ref[...]).astype(jnp.float32)   # lane-bcast cmp  (VPU)
    pred_t = jnp.dot(leaf_diff_t_ref[...], go_left_t,
                     preferred_element_type=jnp.float32)        # [O_pad, tile_b] (MXU)
    fxt_ref[...] = (pred_t + bias_t_ref[...]).astype(fxt_ref.dtype)


def xgb_module_forward(x, feat_onehot, thresholds, leaf_left, leaf_right,
                       *, tile_b_max=4096):
    """JAX wrapper: equivalent of XGBModule.forward(input_data) in training mode.

    x:           [B, F]   input features (row = sample)
    feat_onehot: [F, T]   one-hot feature-selection matrix (tree t splits on col t)
    thresholds:  [1, T]   split thresholds
    leaf_left:   [T, O]   leaf values when feature <  threshold
    leaf_right:  [T, O]   leaf values when feature >= threshold
    returns FX:  [B, O]   float32 predictions (the FX parameter forward returns)
    """
    B, F = x.shape
    T, O = leaf_left.shape
    T_pad = _round_up(T, SUBLANE)
    O_pad = _round_up(O, SUBLANE)

    # Balanced batch tiling on the lane axis (tile_b must be a multiple of 128).
    # Force >= 2 grid steps for mid/large batches so v7x's 2 TCs both engage.
    num_tiles = pl.cdiv(B, tile_b_max)
    if B >= 2 * LANE:
        num_tiles = max(num_tiles, 2)
    num_tiles = max(num_tiles, 1)
    tile_b = _round_up(pl.cdiv(B, num_tiles), LANE)
    B_pad = num_tiles * tile_b

    f32 = jnp.float32

    # x^T with batch on the lane axis; zero-pad fused into the one transpose pass
    # (skipped entirely when B is already tile-aligned).
    x_t = jnp.transpose(x).astype(f32)                     # [F, B]
    if B_pad != B:
        x_t = jnp.pad(x_t, ((0, 0), (0, B_pad - B)))       # [F, B_pad]

    # Tiny resident parameters (O(T*F + T*O) host-side prep).
    featsel_t = jnp.zeros((T_pad, F), f32).at[:T, :].set(
        jnp.transpose(feat_onehot).astype(f32))
    thr_t = jnp.zeros((T_pad, 1), f32).at[:T, :].set(
        jnp.transpose(thresholds).astype(f32))
    leaf_diff_t = jnp.zeros((O_pad, T_pad), f32).at[:O, :T].set(
        jnp.transpose((leaf_left - leaf_right).astype(f32)))
    bias_t = jnp.zeros((O_pad, 1), f32).at[:O, :].set(
        jnp.transpose(jnp.sum(leaf_right.astype(f32), axis=0, keepdims=True))
        + BASE_SCORE)

    grid = (num_tiles,)
    fxt_pad = pl.pallas_call(
        xgb_forward_kernel,
        out_shape=jax.ShapeDtypeStruct((O_pad, B_pad), jnp.float32),
        grid_spec=pltpu.PrefetchScalarGridSpec(
            num_scalar_prefetch=0,
            grid=grid,
            in_specs=[
                pl.BlockSpec((F, tile_b), lambda i: (0, i)),       # batch-tiled x^T
                pl.BlockSpec((T_pad, F), lambda i: (0, 0)),        # resident params
                pl.BlockSpec((T_pad, 1), lambda i: (0, 0)),
                pl.BlockSpec((O_pad, T_pad), lambda i: (0, 0)),
                pl.BlockSpec((O_pad, 1), lambda i: (0, 0)),
            ],
            out_specs=pl.BlockSpec((O_pad, tile_b), lambda i: (0, i)),
        ),
        compiler_params=pltpu.CompilerParams(
            dimension_semantics=("parallel",)),   # shards batch tiles on v7x's 2 TCs
    )(x_t, featsel_t, thr_t, leaf_diff_t, bias_t)

    # Slice off padded trees/outputs/batch rows and return the [B, O] FX.
    return jnp.transpose(fxt_pad[:O, :B])


if __name__ == "__main__":
    # small shapes consistent with XGBModule(batch_size, input_dim, output_dim)
    B, F, O, T = 32, 16, 4, 8  # batch_size, input_dim, output_dim, #boosted stumps

    key = jax.random.PRNGKey(0)
    k1, k2, k3, k4 = jax.random.split(key, 4)

    x = jax.random.normal(k1, (B, F), dtype=jnp.float32)

    # deterministic synthetic "booster" parameters
    feat_idx = jnp.arange(T) % F                                     # tree t splits on feature feat_idx[t]
    feat_onehot = jax.nn.one_hot(feat_idx, F, dtype=jnp.float32).T   # [F, T]
    thresholds = jax.random.normal(k2, (1, T), dtype=jnp.float32)
    leaf_left = 0.1 * jax.random.normal(k3, (T, O), dtype=jnp.float32)
    leaf_right = 0.1 * jax.random.normal(k4, (T, O), dtype=jnp.float32)

    fx = jax.block_until_ready(
        xgb_module_forward(x, feat_onehot, thresholds, leaf_left, leaf_right)
    )
    assert fx.shape == (B, O) and fx.dtype == jnp.float32

    # pure-JAX reference of the stump-ensemble prediction (unfused formulation)
    xsel = x @ feat_onehot
    mask = (xsel < thresholds).astype(jnp.float32)
    ref = mask @ leaf_left + (1.0 - mask) @ leaf_right + BASE_SCORE
    assert jnp.allclose(fx, ref, atol=1e-5, rtol=1e-5)

    # exact XGBModule semantics right after __init__ (num_boost_round=0, base_score=0):
    # bst.predict == all zeros, so forward returns FX == zeros([batch, output_dim]).
    fx0 = jax.block_until_ready(
        xgb_module_forward(x, feat_onehot, thresholds,
                           jnp.zeros_like(leaf_left), jnp.zeros_like(leaf_right))
    )
    assert jnp.allclose(fx0, jnp.zeros((B, O), jnp.float32))

    # sanity: a batch large enough to get >=2 grid tiles exercises the grid path
    # (2144 rows -> 2 tiles of 1152 with the balanced tiling)
    B2 = 2048 + 96
    x2 = jax.random.normal(k1, (B2, F), dtype=jnp.float32)
    fx2 = jax.block_until_ready(
        xgb_module_forward(x2, feat_onehot, thresholds, leaf_left, leaf_right)
    )
    xsel2 = x2 @ feat_onehot
    mask2 = (xsel2 < thresholds).astype(jnp.float32)
    ref2 = mask2 @ leaf_left + (1.0 - mask2) @ leaf_right + BASE_SCORE
    assert fx2.shape == (B2, O)
    assert jnp.allclose(fx2, ref2, atol=1e-5, rtol=1e-5)

    print("KERNEL_OK")
</pallas_src>

<mosaic_0001>
module attributes {stable_mosaic.version = 11 : i64} {
  func.func @xgb_forward_kernel(%arg0: i32, %arg1: memref<16x128xf32, #tpu.memory_space<vmem>>, %arg2: memref<8x16xf32, #tpu.memory_space<vmem>>, %arg3: memref<8x1xf32, #tpu.memory_space<vmem>>, %arg4: memref<8x8xf32, #tpu.memory_space<vmem>>, %arg5: memref<8x1xf32, #tpu.memory_space<vmem>>, %arg6: memref<8x128xf32, #tpu.memory_space<vmem>>) attributes {dimension_semantics = [#tpu.dimension_semantics<parallel>], iteration_bounds = array<i64: 1>, scalar_prefetch = 0 : i64, scratch_operands = 0 : i64, tpu.core_type = #tpu.core_type<tc>, window_params = [{transform_indices = @transform_0, window_bounds = array<i64: 16, 128>}, {pipeline_mode = #tpu.pipeline_mode<synchronous>, transform_indices = @transform_1, window_bounds = array<i64: 8, 16>}, {pipeline_mode = #tpu.pipeline_mode<synchronous>, transform_indices = @transform_2, window_bounds = array<i64: 8, 1>}, {pipeline_mode = #tpu.pipeline_mode<synchronous>, transform_indices = @transform_3, window_bounds = array<i64: 8, 8>}, {pipeline_mode = #tpu.pipeline_mode<synchronous>, transform_indices = @transform_4, window_bounds = array<i64: 8, 1>}, {transform_indices = @transform_5, window_bounds = array<i64: 8, 128>}]} {
    %c0 = arith.constant 0 : index
    %c0_0 = arith.constant 0 : index
    %0 = vector.load %arg2[%c0, %c0_0] : memref<8x16xf32, #tpu.memory_space<vmem>>, vector<8x16xf32>
    %c0_1 = arith.constant 0 : index
    %c0_2 = arith.constant 0 : index
    %1 = vector.load %arg1[%c0_1, %c0_2] : memref<16x128xf32, #tpu.memory_space<vmem>>, vector<16x128xf32>
    %cst = arith.constant dense<0.000000e+00> : vector<8x128xf32>
    %2 = tpu.matmul %0, %1, %cst {dimension_numbers = #tpu.dot_dimension_numbers<[1], [0], [0], [1], [0, 0, 1, 1], [], []>} : vector<8x16xf32>, vector<16x128xf32>, vector<8x128xf32> -> vector<8x128xf32>
    %c0_3 = arith.constant 0 : index
    %c0_4 = arith.constant 0 : index
    %3 = vector.load %arg3[%c0_3, %c0_4] : memref<8x1xf32, #tpu.memory_space<vmem>>, vector<8x1xf32>
    %4 = vector.broadcast %3 : vector<8x1xf32> to vector<8x128xf32>
    %5 = arith.cmpf olt, %2, %4 : vector<8x128xf32>
    %6 = arith.extui %5 : vector<8x128xi1> to vector<8x128xi32>
    %7 = arith.sitofp %6 : vector<8x128xi32> to vector<8x128xf32>
    %c0_5 = arith.constant 0 : index
    %c0_6 = arith.constant 0 : index
    %8 = vector.load %arg4[%c0_5, %c0_6] : memref<8x8xf32, #tpu.memory_space<vmem>>, vector<8x8xf32>
    %cst_7 = arith.constant dense<0.000000e+00> : vector<8x128xf32>
    %9 = tpu.matmul %8, %7, %cst_7 {dimension_numbers = #tpu.dot_dimension_numbers<[1], [0], [0], [1], [0, 0, 1, 1], [], []>} : vector<8x8xf32>, vector<8x128xf32>, vector<8x128xf32> -> vector<8x128xf32>
    %c0_8 = arith.constant 0 : index
    %c0_9 = arith.constant 0 : index
    %10 = vector.load %arg5[%c0_8, %c0_9] : memref<8x1xf32, #tpu.memory_space<vmem>>, vector<8x1xf32>
    %11 = vector.broadcast %10 : vector<8x1xf32> to vector<8x128xf32>
    %12 = arith.addf %9, %11 : vector<8x128xf32>
    %c0_10 = arith.constant 0 : index
    %c0_11 = arith.constant 0 : index
    %13 = vector.load %arg6[%c0_10, %c0_11] : memref<8x128xf32, #tpu.memory_space<vmem>>, vector<8x128xf32>
    tpu.vector_store %arg6[%c0_10, %c0_11], %12 {strides = array<i32>} : memref<8x128xf32, #tpu.memory_space<vmem>>, vector<8x128xf32>,
    return
  }
  func.func @transform_0(%arg0: i32) -> (i32, i32) {
    %c0_i32 = arith.constant 0 : i32
    %c0_i32_0 = arith.constant 0 : i32
    return %c0_i32, %arg0 : i32, i32
  }
  func.func @transform_1(%arg0: i32) -> (i32, i32) {
    %c0_i32 = arith.constant 0 : i32
    %c0_i32_0 = arith.constant 0 : i32
    %c0_i32_1 = arith.constant 0 : i32
    return %c0_i32, %c0_i32_0 : i32, i32
  }
  func.func @transform_2(%arg0: i32) -> (i32, i32) {
    %c0_i32 = arith.constant 0 : i32
    %c0_i32_0 = arith.constant 0 : i32
    %c0_i32_1 = arith.constant 0 : i32
    return %c0_i32, %c0_i32_0 : i32, i32
  }
  func.func @transform_3(%arg0: i32) -> (i32, i32) {
    %c0_i32 = arith.constant 0 : i32
    %c0_i32_0 = arith.constant 0 : i32
    %c0_i32_1 = arith.constant 0 : i32
    return %c0_i32, %c0_i32_0 : i32, i32
  }
  func.func @transform_4(%arg0: i32) -> (i32, i32) {
    %c0_i32 = arith.constant 0 : i32
    %c0_i32_0 = arith.constant 0 : i32
    %c0_i32_1 = arith.constant 0 : i32
    return %c0_i32, %c0_i32_0 : i32, i32
  }
  func.func @transform_5(%arg0: i32) -> (i32, i32) {
    %c0_i32 = arith.constant 0 : i32
    %c0_i32_0 = arith.constant 0 : i32
    return %c0_i32, %arg0 : i32, i32
  }
}

</mosaic_0001>

<bundles_post_ra>
// kernel: tpu_custom_call.1
= control target key start
LH: loop header
LB: loop body
LE: loop exit
PB: predicated region body
PF: predicated region fallthrough
CT: control target
= control target key end

     0   :  { %10 = vsyncpa [#allocation3], 0  ;;  %s279_s0 = inlined_call_operand.vmem [shape: f32[16,128], index: 0, kind: input, shape index: {}]   ;;  %s280_s1 = inlined_call_operand.hbm [shape: f32[8,16], index: 1, kind: input, shape index: {}]   ;;  %s281_s2 = inlined_call_operand.vmem [shape: f32[8,1], index: 2, kind: input, shape index: {}]   ;;  %s282_s3 = inlined_call_operand.hbm [shape: f32[8,8], index: 3, kind: input, shape index: {}]   ;;  %s283_s4 = inlined_call_operand.vmem [shape: f32[8,1], index: 4, kind: input, shape index: {}]   ;;  %s284_s5 = inlined_call_operand.hbm [shape: f32[8,128], index: 5, kind: output, shape index: {}]  }
   0x1   :  { %11 = vsyncpa [#allocation6], 0 }
   0x2   :  { %12 = vsyncpa [#allocation4], 0  ;;  %s20_s20 = sshll.u32 %s280_s1, 4  ;;  %s223_s21 = smov [#allocation2]   ;;  %s21_s20 = int_to_ptr.hbm [resolvable:$true] %s20_s20 }
   0x3   :  { %s22_s22 = sshll.u32 %s223_s21, 4  ;;  %s33_s25 = sshll.u32 %s282_s3, 4  ;;  %s23_s22 = int_to_ptr.vmem [resolvable:$true] %s22_s22  ;;  %s34_s25 = int_to_ptr.hbm [resolvable:$true] %s33_s25 }
   0x4   :  { %25 = dma.hbm_to_vmem [thread:$0]  %s21_s20, 128, %s23_s22, [#allocation3]  }
   0x5   :  { %s224_s26 = smov [#allocation5]  }
   0x6   :  { %s35_s27 = sshll.u32 %s224_s26, 4  ;;  %s36_s27 = int_to_ptr.vmem [resolvable:$true] %s35_s27 }
   0x7   :  { %38 = dma.hbm_to_vmem [thread:$0]  %s34_s25, 128, %s36_s27, [#allocation6]  }
   0x8   :  { %217 = dma.done.wait [#allocation3], 128  }
   0x9   :  { %218 = vsyncadd [#allocation3], 4294967168 }
   0xa   :  { %219 = dma.done.wait [#allocation6], 128  }
   0xb   :  { %220 = vsyncadd [#allocation6], 4294967168  ;;  %v225_v0 = vmov 0   ;;  %v51_v1 = vld [vmem:[%s279_s0 + $0x8] sm:$0xff]  ;;  %v50_v2 = vld [vmem:[%s279_s0] sm:$0xff]  ;;  %vm52_vm0 = vcmask 130048  }
   0xc   :  { %144 = vset.pattern.permute.xlu0 %v225_v0  ;;  %70 = vmatpush.msra.mxu0 %v51_v1  ;;  %v49_v3 = vld [vmem:[#allocation2] sm:$0xff]  ;;  %v85_v8 = vld [vmem:[#allocation5] sm:$0xff]  ;;  %vm92_vm1 = vcmask 64512   ;;  %v226_v9 = vmov 1.0   ;;  %s227_s0 = smov [#allocation7]   ;;  %s124_s11 = sshll.u32 %s284_s5, 4  ;;  %s125_s11 = int_to_ptr.hbm [resolvable:$true] %s124_s11 }
   0xd   :  { %v76_v4 = vld [vmem:[%s281_s2] sm:$0xff]  ;;  %s122_s9 = sshll.u32 %s227_s0, 4  ;;  %s123_s9 = int_to_ptr.vmem [resolvable:$true] %s122_s9 }
   0xe   :  { %79 = vperm.xlu0 %144, %v76_v4   ;;  %71 = vmatpush.msra.mxu0 %v50_v2  ;;  %v86_v5 = vld [vmem:[%s283_s4] sm:$0xff] }
   0xf   :  { %135 = vmatmul.msk.f32.vlgmr.msra.gmra.mxu0 %vm52_vm0, %v49_v3 }
  0x16   :  { %89 = vperm.xlu0 %144, %v86_v5  }
  0x80   :  { %v80_v6 = vpop.permute.xlu0 %79 }
  0x88   :  { %v90_v10 = vpop.permute.xlu0 %89 }
  0x8c   :  { %v73_v7 = vpop.f32.mrf.mxu0 }
  0x8d   :  { %vm82_vm2 = vcmp.lt.f32.partialorder %v73_v7, %v80_v6 }
  0x8e   :  { %137 = vmatpush.msk.msra.mxu1 %vm82_vm2, %v226_v9 }
  0x8f   :  { %138 = vmatmul.msk.f32.vlgmr.msra.gmra.mxu1 %vm92_vm1, %v85_v8 }
 0x10c   :  { %v113_v11 = vpop.f32.mrf.mxu1 }
 0x10d   :  { %v114_v12 = vadd.f32 %v113_v11, %v90_v10 }
 0x10f   :  { %116 = vst [vmem:[#allocation7] sm:$0xff] %v114_v12 }
 0x110   :  { %127 = dma.vmem_to_hbm [thread:$0]  %s123_s9, 128, %s125_s11, [#allocation4]  }
 0x111   :  { %221 = dma.done.wait [#allocation4], 128  }
 0x112   :  { %222 = vsyncadd [#allocation4], 4294967168 }
 0x113   :  { %132 = vsyncpa [#allocation3], 1 }
 0x114   :  { %133 = vsyncpa [#allocation6], 1 }
 0x115   :  { %134 = vsyncpa [#allocation4], 1 }

</bundles_post_ra>
